<compile_context>
chip_gen: v6e
topology: v6e:2x2x1
jax: 0.10.0
libtpu: 0.0.40
codegen_flags: <defaults>
</compile_context>

<pallas_src>
import jax
import jax.numpy as jnp
import numpy as np
from jax.experimental import pallas as pl
from jax.experimental.pallas import tpu as pltpu


def _round_up(x, m):
    return (x + m - 1) // m * m


def uncertainty_mlp_kernel(y_ref, w1t_ref, b1_ref, w2t_ref, b2_ref, o_ref):
    # y_ref  : [tb, S]       activations in natural (batch-major) layout
    # w1t_ref: [S, H_pad]    W1.T, zero-padded along the hidden axis
    # b1_ref : [1, H_pad]    b1, zero-padded along the hidden axis
    # w2t_ref: [H_pad, S]    W2.T, zero-padded along the hidden axis
    # b2_ref : [1, S]
    h = jnp.tanh(
        jnp.dot(y_ref[...], w1t_ref[...], preferred_element_type=jnp.float32)
        + b1_ref[...]
    )  # [tb, H_pad]; padded hidden columns are tanh(0)=0 and contribute nothing below
    out = jnp.dot(h, w2t_ref[...], preferred_element_type=jnp.float32) + b2_ref[...]
    o_ref[...] = out.astype(o_ref.dtype)  # [tb, S]


def pack_params(params, *, hidden_align=64):
    """One-time prep: transpose to right-multiply layout, zero-pad hidden dim."""
    w1, b1, w2, b2 = params  # PyTorch nn.Linear layouts: [H,S], [H], [S,H], [S]
    H, S = w1.shape
    H_pad = _round_up(H, hidden_align)

    w1t = jnp.zeros((S, H_pad), jnp.float32).at[:, :H].set(jnp.asarray(w1, jnp.float32).T)
    b1p = jnp.zeros((1, H_pad), jnp.float32).at[0, :H].set(jnp.asarray(b1, jnp.float32))
    w2t = jnp.zeros((H_pad, S), jnp.float32).at[:H, :].set(jnp.asarray(w2, jnp.float32).T)
    b2p = jnp.asarray(b2, jnp.float32).reshape(1, S)
    return {"w1t": w1t, "b1": b1p, "w2t": w2t, "b2": b2p, "S": S, "H": H, "H_pad": H_pad}


def uncertainty_model_forward(t, y, packed, *, max_tb=4096):
    """Mirrors UncertaintyModel.forward: `t` is accepted but unused."""
    del t  # the PyTorch module ignores the time argument
    y = jnp.asarray(y, jnp.float32)
    B, S = y.shape
    assert S == packed["S"], "state_dim mismatch between y and packed params"
    H, H_pad = packed["H"], packed["H_pad"]

    if B <= max_tb:
        # Whole batch in one tile: no padding, no relayout, single grid step.
        tb, B_pad = B, B
        y_in = y
    else:
        # Large batches: tile the batch axis in lane-friendly chunks (multiple
        # of 128) so the "parallel" axis can shard across v7x's two TCs while
        # each step still amortizes its fixed overhead.  Padded rows compute
        # throwaway values that are sliced off below.
        tb = max_tb
        B_pad = _round_up(B, tb)
        y_in = jnp.pad(y, ((0, B_pad - B), (0, 0)))

    grid = (B_pad // tb,)
    out = pl.pallas_call(
        uncertainty_mlp_kernel,
        out_shape=jax.ShapeDtypeStruct((B_pad, S), jnp.float32),
        grid=grid,
        in_specs=[
            pl.BlockSpec((tb, S), lambda i: (i, 0)),      # activation tile (batch-tiled)
            pl.BlockSpec((S, H_pad), lambda i: (0, 0)),   # W1^T resident in VMEM
            pl.BlockSpec((1, H_pad), lambda i: (0, 0)),   # b1 resident
            pl.BlockSpec((H_pad, S), lambda i: (0, 0)),   # W2^T resident
            pl.BlockSpec((1, S), lambda i: (0, 0)),       # b2 resident
        ],
        out_specs=pl.BlockSpec((tb, S), lambda i: (i, 0)),
        compiler_params=pltpu.CompilerParams(
            dimension_semantics=("parallel",),
        ),
        cost_estimate=pl.CostEstimate(
            flops=4 * B * S * H,            # two matmuls on the *real* dims
            transcendentals=B * H,          # tanh
            bytes_accessed=4 * (2 * B * S + 2 * S * H + H + S),
        ),
    )(y_in, packed["w1t"], packed["b1"], packed["w2t"], packed["b2"])

    return out if B_pad == B else out[:B]


def init_params(key, state_dim, hidden_dim=50):
    """Deterministic init matching nn.Linear layouts (weight = [out_features, in_features])."""
    k1, k2, k3, k4 = jax.random.split(key, 4)
    lim1 = 1.0 / np.sqrt(state_dim)
    lim2 = 1.0 / np.sqrt(hidden_dim)
    w1 = jax.random.uniform(k1, (hidden_dim, state_dim), jnp.float32, -lim1, lim1)
    b1 = jax.random.uniform(k2, (hidden_dim,), jnp.float32, -lim1, lim1)
    w2 = jax.random.uniform(k3, (state_dim, hidden_dim), jnp.float32, -lim2, lim2)
    b2 = jax.random.uniform(k4, (state_dim,), jnp.float32, -lim2, lim2)
    return w1, b1, w2, b2


if __name__ == "__main__":
    state_dim = 4
    hidden_dim = 50
    batch = 256  # small batch -> single whole-batch tile, grid=(1,), zero wrapper relayout

    key = jax.random.PRNGKey(0)
    kp, ky = jax.random.split(key)
    params = init_params(kp, state_dim, hidden_dim)   # PyTorch nn.Linear layouts
    y = jax.random.normal(ky, (batch, state_dim), jnp.float32)
    t = jnp.float32(0.0)                              # unused, mirrors forward(t, y)

    packed = pack_params(params)                      # one-time weight padding/transpose
    out = uncertainty_model_forward(t, y, packed)
    out = jax.block_until_ready(out)

    # Pure-JAX reference (PyTorch semantics: x @ W.T + b)
    w1, b1, w2, b2 = params
    ref = jnp.tanh(y @ w1.T + b1) @ w2.T + b2
    assert out.shape == (batch, state_dim)
    np.testing.assert_allclose(np.asarray(out), np.asarray(ref), rtol=1e-5, atol=1e-5)

    print("KERNEL_OK")
</pallas_src>

<mosaic_0001>
module attributes {stable_mosaic.version = 11 : i64} {
  func.func @uncertainty_mlp_kernel(%arg0: i32, %arg1: memref<256x4xf32, #tpu.memory_space<vmem>>, %arg2: memref<4x64xf32, #tpu.memory_space<vmem>>, %arg3: memref<1x64xf32, #tpu.memory_space<vmem>>, %arg4: memref<64x4xf32, #tpu.memory_space<vmem>>, %arg5: memref<1x4xf32, #tpu.memory_space<vmem>>, %arg6: memref<256x4xf32, #tpu.memory_space<vmem>>) attributes {dimension_semantics = [#tpu.dimension_semantics<parallel>], iteration_bounds = array<i64: 1>, scalar_prefetch = 0 : i64, scratch_operands = 0 : i64, tpu.core_type = #tpu.core_type<tc>, window_params = [{transform_indices = @transform_0, window_bounds = array<i64: 256, 4>}, {pipeline_mode = #tpu.pipeline_mode<synchronous>, transform_indices = @transform_1, window_bounds = array<i64: 4, 64>}, {pipeline_mode = #tpu.pipeline_mode<synchronous>, transform_indices = @transform_2, window_bounds = array<i64: 1, 64>}, {pipeline_mode = #tpu.pipeline_mode<synchronous>, transform_indices = @transform_3, window_bounds = array<i64: 64, 4>}, {pipeline_mode = #tpu.pipeline_mode<synchronous>, transform_indices = @transform_4, window_bounds = array<i64: 1, 4>}, {transform_indices = @transform_5, window_bounds = array<i64: 256, 4>}]} {
    %c0 = arith.constant 0 : index
    %c0_0 = arith.constant 0 : index
    %0 = vector.load %arg1[%c0, %c0_0] : memref<256x4xf32, #tpu.memory_space<vmem>>, vector<256x4xf32>
    %c0_1 = arith.constant 0 : index
    %c0_2 = arith.constant 0 : index
    %1 = vector.load %arg2[%c0_1, %c0_2] : memref<4x64xf32, #tpu.memory_space<vmem>>, vector<4x64xf32>
    %cst = arith.constant dense<0.000000e+00> : vector<256x64xf32>
    %2 = tpu.matmul %0, %1, %cst {dimension_numbers = #tpu.dot_dimension_numbers<[1], [0], [0], [1], [0, 0, 1, 1], [], []>} : vector<256x4xf32>, vector<4x64xf32>, vector<256x64xf32> -> vector<256x64xf32>
    %c0_3 = arith.constant 0 : index
    %c0_4 = arith.constant 0 : index
    %3 = vector.load %arg3[%c0_3, %c0_4] : memref<1x64xf32, #tpu.memory_space<vmem>>, vector<1x64xf32>
    %4 = vector.broadcast %3 : vector<1x64xf32> to vector<256x64xf32>
    %5 = arith.addf %2, %4 : vector<256x64xf32>
    %6 = math.tanh %5 : vector<256x64xf32>
    %c0_5 = arith.constant 0 : index
    %c0_6 = arith.constant 0 : index
    %7 = vector.load %arg4[%c0_5, %c0_6] : memref<64x4xf32, #tpu.memory_space<vmem>>, vector<64x4xf32>
    %cst_7 = arith.constant dense<0.000000e+00> : vector<256x4xf32>
    %8 = tpu.matmul %6, %7, %cst_7 {dimension_numbers = #tpu.dot_dimension_numbers<[1], [0], [0], [1], [0, 0, 1, 1], [], []>} : vector<256x64xf32>, vector<64x4xf32>, vector<256x4xf32> -> vector<256x4xf32>
    %c0_8 = arith.constant 0 : index
    %c0_9 = arith.constant 0 : index
    %9 = vector.load %arg5[%c0_8, %c0_9] : memref<1x4xf32, #tpu.memory_space<vmem>>, vector<1x4xf32>
    %10 = vector.broadcast %9 : vector<1x4xf32> to vector<256x4xf32>
    %11 = arith.addf %8, %10 : vector<256x4xf32>
    %c0_10 = arith.constant 0 : index
    %c0_11 = arith.constant 0 : index
    %12 = vector.load %arg6[%c0_10, %c0_11] : memref<256x4xf32, #tpu.memory_space<vmem>>, vector<256x4xf32>
    tpu.vector_store %arg6[%c0_10, %c0_11], %11 {strides = array<i32>} : memref<256x4xf32, #tpu.memory_space<vmem>>, vector<256x4xf32>,
    return
  }
  func.func @transform_0(%arg0: i32) -> (i32, i32) {
    %c0_i32 = arith.constant 0 : i32
    %c0_i32_0 = arith.constant 0 : i32
    return %arg0, %c0_i32 : i32, i32
  }
  func.func @transform_1(%arg0: i32) -> (i32, i32) {
    %c0_i32 = arith.constant 0 : i32
    %c0_i32_0 = arith.constant 0 : i32
    %c0_i32_1 = arith.constant 0 : i32
    return %c0_i32, %c0_i32_0 : i32, i32
  }
  func.func @transform_2(%arg0: i32) -> (i32, i32) {
    %c0_i32 = arith.constant 0 : i32
    %c0_i32_0 = arith.constant 0 : i32
    %c0_i32_1 = arith.constant 0 : i32
    return %c0_i32, %c0_i32_0 : i32, i32
  }
  func.func @transform_3(%arg0: i32) -> (i32, i32) {
    %c0_i32 = arith.constant 0 : i32
    %c0_i32_0 = arith.constant 0 : i32
    %c0_i32_1 = arith.constant 0 : i32
    return %c0_i32, %c0_i32_0 : i32, i32
  }
  func.func @transform_4(%arg0: i32) -> (i32, i32) {
    %c0_i32 = arith.constant 0 : i32
    %c0_i32_0 = arith.constant 0 : i32
    %c0_i32_1 = arith.constant 0 : i32
    return %c0_i32, %c0_i32_0 : i32, i32
  }
  func.func @transform_5(%arg0: i32) -> (i32, i32) {
    %c0_i32 = arith.constant 0 : i32
    %c0_i32_0 = arith.constant 0 : i32
    return %arg0, %c0_i32 : i32, i32
  }
}

</mosaic_0001>

<bundles_post_ra>
// kernel: tpu_custom_call.1
= control target key start
LH: loop header
LB: loop body
LE: loop exit
PB: predicated region body
PF: predicated region fallthrough
CT: control target
= control target key end

     0   :  { %vm157_vm0 = vcmask 1043456   ;;  %vm60_vm1 = vcmask 31744   ;;  %vm433_vm2 = vcmask 523264   ;;  %s1544_s1 = inlined_call_operand.vmem [shape: f32[4,64], index: 1, kind: input, shape index: {}]   ;;  %s1545_s0 = inlined_call_operand.vmem [shape: f32[256,4], index: 0, kind: input, shape index: {}]   ;;  %s1546_s3 = inlined_call_operand.vmem [shape: f32[64,4], index: 3, kind: input, shape index: {}]   ;;  %s1547_s2 = inlined_call_operand.vmem [shape: f32[1,64], index: 2, kind: input, shape index: {}]   ;;  %s1548_s4 = inlined_call_operand.vmem [shape: f32[1,4], index: 4, kind: input, shape index: {}]   ;;  %s1549_s5 = inlined_call_operand.vmem [shape: f32[256,4], index: 5, kind: output, shape index: {}]  }
   0x1   :  { %v52_v0 = vld [vmem:[%s1544_s1] sm:$0xf]  ;;  %v21_v2 = vld [vmem:[%s1545_s0 + $0x8] sm:$0xff]  ;;  %v22_v3 = vld [vmem:[%s1545_s0 + $0x10] sm:$0xff] }
   0x2   :  { %v20_v1 = vld [vmem:[%s1545_s0] sm:$0xff]  ;;  %931 = vmatprep.subr.msk.mxu0 %vm157_vm0, %v52_v0  ;;  %v23_v4 = vld [vmem:[%s1545_s0 + $0x18] sm:$0xff]  ;;  %v25_v6 = vld [vmem:[%s1545_s0 + $0x28] sm:$0xff] }
   0x3   :  { %933 = vmatprep.mubr.msk.f32.mxu0 %vm60_vm1, %v20_v1  ;;  %932 = vmatpush3.msk.msra.mxu0 %vm157_vm0, %v52_v0  ;;  %v24_v5 = vld [vmem:[%s1545_s0 + $0x20] sm:$0xff]  ;;  %v26_v7 = vld [vmem:[%s1545_s0 + $0x30] sm:$0xff]  ;;  %v27_v8 = vld [vmem:[%s1545_s0 + $0x38] sm:$0xff] }
   0x4   :  { %934 = vmatmul.mubr.msk.f32.vlgmr.msra.gmra.mxu0 %vm60_vm1, %v21_v2  ;;  %v28_v9 = vld [vmem:[%s1545_s0 + $0x40] sm:$0xff]  ;;  %v29_v10 = vld [vmem:[%s1545_s0 + $0x48] sm:$0xff]  ;;  %v30_v11 = vld [vmem:[%s1545_s0 + $0x50] sm:$0xff] }
   0x5   :  { %936 = vmatprep.mubr.msk.f32.mxu0 %vm60_vm1, %v22_v3  ;;  %v31_v12 = vld [vmem:[%s1545_s0 + $0x58] sm:$0xff]  ;;  %v32_v13 = vld [vmem:[%s1545_s0 + $0x60] sm:$0xff]  ;;  %v33_v14 = vld [vmem:[%s1545_s0 + $0x68] sm:$0xff] }
   0x6   :  { %v34_v15 = vld [vmem:[%s1545_s0 + $0x70] sm:$0xff]  ;;  %v35_v16 = vld [vmem:[%s1545_s0 + $0x78] sm:$0xff]  ;;  %v36_v17 = vld [vmem:[%s1545_s0 + $0x80] sm:$0xff] }
   0x7   :  { %v37_v18 = vld [vmem:[%s1545_s0 + $0x88] sm:$0xff]  ;;  %v38_v19 = vld [vmem:[%s1545_s0 + $0x90] sm:$0xff]  ;;  %v39_v20 = vld [vmem:[%s1545_s0 + $0x98] sm:$0xff] }
   0x8   :  { %937 = vmatmul.mubr.msk.f32.gmra.mxu0 %vm60_vm1, %v23_v4  ;;  %v40_v21 = vld [vmem:[%s1545_s0 + $0xa0] sm:$0xff]  ;;  %v41_v22 = vld [vmem:[%s1545_s0 + $0xa8] sm:$0xff]  ;;  %v42_v23 = vld [vmem:[%s1545_s0 + $0xb0] sm:$0xff] }
   0x9   :  { %939 = vmatprep.mubr.msk.f32.mxu0 %vm60_vm1, %v24_v5  ;;  %v43_v24 = vld [vmem:[%s1545_s0 + $0xb8] sm:$0xff]  ;;  %v44_v25 = vld [vmem:[%s1545_s0 + $0xc0] sm:$0xff]  ;;  %v45_v26 = vld [vmem:[%s1545_s0 + $0xc8] sm:$0xff] }
   0xa   :  { %v46_v27 = vld [vmem:[%s1545_s0 + $0xd0] sm:$0xff]  ;;  %v47_v28 = vld [vmem:[%s1545_s0 + $0xd8] sm:$0xff]  ;;  %v48_v29 = vld [vmem:[%s1545_s0 + $0xe0] sm:$0xff] }
   0xb   :  { %v49_v30 = vld [vmem:[%s1545_s0 + $0xe8] sm:$0xff]  ;;  %v50_v31 = vld [vmem:[%s1545_s0 + $0xf0] sm:$0xff]  ;;  %v51_v32 = vld [vmem:[%s1545_s0 + $0xf8] sm:$0xff] }
   0xc   :  { %940 = vmatmul.mubr.msk.f32.gmra.mxu0 %vm60_vm1, %v25_v6  ;;  %v425_v33 = vld [vmem:[%s1546_s3 + $0x38] sm:$0xff]  ;;  %v424_v34 = vld [vmem:[%s1546_s3 + $0x30] sm:$0xff]  ;;  %v423_v35 = vld [vmem:[%s1546_s3 + $0x28] sm:$0xff] }
   0xd   :  { %942 = vmatprep.mubr.msk.f32.mxu0 %vm60_vm1, %v26_v7  ;;  %981 = vmatprep.subr.mxu0 %v425_v33  ;;  %v422_v36 = vld [vmem:[%s1546_s3 + $0x20] sm:$0xff]  ;;  %v421_v37 = vld [vmem:[%s1546_s3 + $0x18] sm:$0xff]  ;;  %v420_v38 = vld [vmem:[%s1546_s3 + $0x10] sm:$0xff] }
   0xe   :  { %1045 = vmatprep.subr.mxu1 %v425_v33  ;;  %982 = vmatpush3.msra.mxu0 %v425_v33  ;;  %v419_v39 = vld [vmem:[%s1546_s3 + $0x8] sm:$0xff]  ;;  %v418_v40 = vld [vmem:[%s1546_s3] sm:$0xff] }
   0xf   :  { %1053 = vmatpush3.msra.mxu1 %v425_v33  ;;  %983 = vmatprep.subr.mxu0 %v424_v34  ;;  %v1313_v41 = vld [vmem:[%s1547_s2] ss:$0 sm:$0xff] }
  0x10   :  { %943 = vmatmul.mubr.msk.f32.gmra.mxu0 %vm60_vm1, %v27_v8  ;;  %1046 = vmatprep.subr.mxu1 %v424_v34 }
  0x11   :  { %945 = vmatprep.mubr.msk.f32.mxu0 %vm60_vm1, %v28_v9  ;;  %984 = vmatpush3.msra.mxu0 %v424_v34 }
  0x12   :  { %1054 = vmatpush3.msra.mxu1 %v424_v34  ;;  %985 = vmatprep.subr.mxu0 %v423_v35 }
  0x13   :  { %1047 = vmatprep.subr.mxu1 %v423_v35  ;;  %986 = vmatpush3.msra.mxu0 %v423_v35 }
  0x14   :  { %946 = vmatmul.mubr.msk.f32.gmra.mxu0 %vm60_vm1, %v29_v10  ;;  %1055 = vmatpush3.msra.mxu1 %v423_v35 }
  0x15   :  { %948 = vmatprep.mubr.msk.f32.mxu0 %vm60_vm1, %v30_v11  ;;  %987 = vmatprep.subr.mxu0 %v422_v36 }
  0x16   :  { %1048 = vmatprep.subr.mxu1 %v422_v36  ;;  %988 = vmatpush3.msra.mxu0 %v422_v36 }
  0x17   :  { %1056 = vmatpush3.msra.mxu1 %v422_v36  ;;  %989 = vmatprep.subr.mxu0 %v421_v37 }
  0x18   :  { %949 = vmatmul.mubr.msk.f32.gmra.mxu0 %vm60_vm1, %v31_v12  ;;  %1049 = vmatprep.subr.mxu1 %v421_v37 }
  0x19   :  { %951 = vmatprep.mubr.msk.f32.mxu0 %vm60_vm1, %v32_v13  ;;  %990 = vmatpush3.msra.mxu0 %v421_v37 }
  0x1a   :  { %1057 = vmatpush3.msra.mxu1 %v421_v37  ;;  %991 = vmatprep.subr.mxu0 %v420_v38 }
  0x1b   :  { %1050 = vmatprep.subr.mxu1 %v420_v38  ;;  %992 = vmatpush3.msra.mxu0 %v420_v38 }
  0x1c   :  { %952 = vmatmul.mubr.msk.f32.gmra.mxu0 %vm60_vm1, %v33_v14  ;;  %1058 = vmatpush3.msra.mxu1 %v420_v38 }
  0x1d   :  { %954 = vmatprep.mubr.msk.f32.mxu0 %vm60_vm1, %v34_v15  ;;  %993 = vmatprep.subr.mxu0 %v419_v39 }
  0x1e   :  { %1051 = vmatprep.subr.mxu1 %v419_v39  ;;  %994 = vmatpush3.msra.mxu0 %v419_v39 }
  0x1f   :  { %1059 = vmatpush3.msra.mxu1 %v419_v39  ;;  %995 = vmatprep.subr.mxu0 %v418_v40 }
  0x20   :  { %955 = vmatmul.mubr.msk.f32.gmra.mxu0 %vm60_vm1, %v35_v16  ;;  %1052 = vmatprep.subr.mxu1 %v418_v40 }
  0x21   :  { %957 = vmatprep.mubr.msk.f32.mxu0 %vm60_vm1, %v36_v17  ;;  %996 = vmatpush3.msra.mxu0 %v418_v40 }
  0x22   :  { %1060 = vmatpush3.msra.mxu1 %v418_v40 }
  0x24   :  { %958 = vmatmul.mubr.msk.f32.gmra.mxu0 %vm60_vm1, %v37_v18 }
  0x25   :  { %960 = vmatprep.mubr.msk.f32.mxu0 %vm60_vm1, %v38_v19 }
  0x28   :  { %961 = vmatmul.mubr.msk.f32.gmra.mxu0 %vm60_vm1, %v39_v20 }
  0x29   :  { %963 = vmatprep.mubr.msk.f32.mxu0 %vm60_vm1, %v40_v21 }
  0x2c   :  { %964 = vmatmul.mubr.msk.f32.gmra.mxu0 %vm60_vm1, %v41_v22 }
  0x2d   :  { %966 = vmatprep.mubr.msk.f32.mxu0 %vm60_vm1, %v42_v23 }
  0x30   :  { %967 = vmatmul.mubr.msk.f32.gmra.mxu0 %vm60_vm1, %v43_v24 }
  0x31   :  { %969 = vmatprep.mubr.msk.f32.mxu0 %vm60_vm1, %v44_v25 }
  0x34   :  { %970 = vmatmul.mubr.msk.f32.gmra.mxu0 %vm60_vm1, %v45_v26 }
  0x35   :  { %972 = vmatprep.mubr.msk.f32.mxu0 %vm60_vm1, %v46_v27 }
  0x38   :  { %973 = vmatmul.mubr.msk.f32.gmra.mxu0 %vm60_vm1, %v47_v28 }
  0x39   :  { %975 = vmatprep.mubr.msk.f32.mxu0 %vm60_vm1, %v48_v29 }
  0x3c   :  { %976 = vmatmul.mubr.msk.f32.gmra.mxu0 %vm60_vm1, %v49_v30 }
  0x3d   :  { %978 = vmatprep.mubr.msk.f32.mxu0 %vm60_vm1, %v50_v31 }
  0x40   :  { %979 = vmatmul.mubr.msk.f32.gmra.mxu0 %vm60_vm1, %v51_v32 }
  0xc4   :  { %v935_v42 = vpop.f32.mrf.mxu0 }
  0xc5   :  { %v233_v43 = vadd.f32 %v935_v42, %v1313_v41 }
  0xc6   :  { %v227_v44 = vpop.f32.mrf.mxu0 }
  0xc7   :  { %v228_v45 = vadd.f32 %v1313_v41, %v227_v44 }
  0xc8   :  { %v938_v46 = vpop.f32.mrf.mxu0 }
  0xc9   :  { %1061 = vtanh.f32 %v228_v45  ;;  %v243_v47 = vadd.f32 %v938_v46, %v1313_v41 }
  0xca   :  { %1063 = vtanh.f32 %v233_v43  ;;  %v237_v48 = vpop.f32.mrf.mxu0 }
  0xcb   :  { %v238_v49 = vadd.f32 %v1313_v41, %v237_v48 }
  0xcc   :  { %v941_v50 = vpop.f32.mrf.mxu0 }
  0xcd   :  { %1065 = vtanh.f32 %v238_v49  ;;  %v253_v51 = vadd.f32 %v941_v50, %v1313_v41 }
  0xce   :  { %1067 = vtanh.f32 %v243_v47  ;;  %v247_v52 = vpop.f32.mrf.mxu0 }
  0xcf   :  { %v248_v53 = vadd.f32 %v1313_v41, %v247_v52 }
  0xd0   :  { %v944_v54 = vpop.f32.mrf.mxu0 }
  0xd1   :  { %1069 = vtanh.f32 %v248_v53  ;;  %v263_v55 = vadd.f32 %v944_v54, %v1313_v41 }
  0xd2   :  { %1071 = vtanh.f32 %v253_v51  ;;  %v257_v56 = vpop.f32.mrf.mxu0 }
  0xd3   :  { %v258_v57 = vadd.f32 %v1313_v41, %v257_v56 }
  0xd4   :  { %v947_v58 = vpop.f32.mrf.mxu0 }
  0xd5   :  { %1073 = vtanh.f32 %v258_v57  ;;  %v273_v60 = vadd.f32 %v947_v58, %v1313_v41 }
  0xd6   :  { %v1062_v59 = vpop.eup %1061  ;;  %1075 = vtanh.f32 %v263_v55  ;;  %v267_v61 = vpop.f32.mrf.mxu0 }
  0xd7   :  { %v1064_v62 = vpop.eup %1063  ;;  %v268_v63 = vadd.f32 %v1313_v41, %v267_v61  ;;  %997 = vmatprep.mubr.msk.f32.mxu0 %vm433_vm2, %v1062_v59 }
  0xd8   :  { %v950_v0 = vpop.f32.mrf.mxu0  ;;  %998 = vmatmul.mubr.msk.f32.vlgmr.msra.gmra.mxu0 %vm433_vm2, %v1064_v62 }
  0xd9   :  { %1077 = vtanh.f32 %v268_v63  ;;  %v283_v2 = vadd.f32 %v950_v0, %v1313_v41 }
  0xda   :  { %v1066_v1 = vpop.eup %1065  ;;  %1079 = vtanh.f32 %v273_v60  ;;  %v277_v3 = vpop.f32.mrf.mxu0 }
  0xdb   :  { %v1068_v4 = vpop.eup %1067  ;;  %v278_v5 = vadd.f32 %v1313_v41, %v277_v3  ;;  %1000 = vmatprep.mubr.msk.f32.mxu1 %vm433_vm2, %v1066_v1 }
  0xdc   :  { %v953_v6 = vpop.f32.mrf.mxu0  ;;  %1001 = vmatmul.mubr.msk.f32.vlgmr.msra.gmra.mxu1 %vm433_vm2, %v1068_v4 }
  0xdd   :  { %1081 = vtanh.f32 %v278_v5  ;;  %v293_v8 = vadd.f32 %v953_v6, %v1313_v41 }
  0xde   :  { %v1070_v7 = vpop.eup %1069  ;;  %1083 = vtanh.f32 %v283_v2  ;;  %v287_v9 = vpop.f32.mrf.mxu0 }
  0xdf   :  { %v1072_v10 = vpop.eup %1071  ;;  %v288_v11 = vadd.f32 %v1313_v41, %v287_v9  ;;  %1003 = vmatprep.mubr.msk.f32.mxu1 %vm433_vm2, %v1070_v7 }
  0xe0   :  { %v956_v12 = vpop.f32.mrf.mxu0  ;;  %1004 = vmatmul.mubr.msk.f32.gmra.mxu1 %vm433_vm2, %v1072_v10  ;;  %v1382_v10 = vld [vmem:[%s1548_s4] ss:$0 sm:$0xff] }
  0xe1   :  { %1085 = vtanh.f32 %v288_v11  ;;  %v303_v14 = vadd.f32 %v956_v12, %v1313_v41 }
  0xe2   :  { %v1074_v13 = vpop.eup %1073  ;;  %1087 = vtanh.f32 %v293_v8  ;;  %v297_v15 = vpop.f32.mrf.mxu0 }
  0xe3   :  { %v1076_v16 = vpop.eup %1075  ;;  %v298_v17 = vadd.f32 %v1313_v41, %v297_v15  ;;  %1006 = vmatprep.mubr.msk.f32.mxu1 %vm433_vm2, %v1074_v13 }
  0xe4   :  { %v959_v18 = vpop.f32.mrf.mxu0  ;;  %1007 = vmatmul.mubr.msk.f32.gmra.mxu1 %vm433_vm2, %v1076_v16 }
  0xe5   :  { %1089 = vtanh.f32 %v298_v17  ;;  %v313_v20 = vadd.f32 %v959_v18, %v1313_v41 }
  0xe6   :  { %v1078_v19 = vpop.eup %1077  ;;  %1091 = vtanh.f32 %v303_v14  ;;  %v307_v21 = vpop.f32.mrf.mxu0 }
  0xe7   :  { %v1080_v22 = vpop.eup %1079  ;;  %v308_v23 = vadd.f32 %v1313_v41, %v307_v21  ;;  %1009 = vmatprep.mubr.msk.f32.mxu1 %vm433_vm2, %v1078_v19 }
  0xe8   :  { %v962_v24 = vpop.f32.mrf.mxu0  ;;  %1010 = vmatmul.mubr.msk.f32.gmra.mxu1 %vm433_vm2, %v1080_v22 }
  0xe9   :  { %1093 = vtanh.f32 %v308_v23  ;;  %v323_v26 = vadd.f32 %v962_v24, %v1313_v41 }
  0xea   :  { %v1082_v25 = vpop.eup %1081  ;;  %1095 = vtanh.f32 %v313_v20  ;;  %v317_v27 = vpop.f32.mrf.mxu0 }
  0xeb   :  { %v1084_v28 = vpop.eup %1083  ;;  %v318_v29 = vadd.f32 %v1313_v41, %v317_v27  ;;  %1012 = vmatprep.mubr.msk.f32.mxu1 %vm433_vm2, %v1082_v25 }
  0xec   :  { %v965_v30 = vpop.f32.mrf.mxu0  ;;  %1013 = vmatmul.mubr.msk.f32.gmra.mxu1 %vm433_vm2, %v1084_v28 }
  0xed   :  { %1097 = vtanh.f32 %v318_v29  ;;  %v333_v32 = vadd.f32 %v965_v30, %v1313_v41 }
  0xee   :  { %v1086_v31 = vpop.eup %1085  ;;  %1099 = vtanh.f32 %v323_v26  ;;  %v327_v33 = vpop.f32.mrf.mxu0 }
  0xef   :  { %v1088_v34 = vpop.eup %1087  ;;  %v328_v35 = vadd.f32 %v1313_v41, %v327_v33  ;;  %1015 = vmatprep.mubr.msk.f32.mxu1 %vm433_vm2, %v1086_v31 }
  0xf0   :  { %v968_v36 = vpop.f32.mrf.mxu0  ;;  %1016 = vmatmul.mubr.msk.f32.gmra.mxu1 %vm433_vm2, %v1088_v34 }
  0xf1   :  { %1101 = vtanh.f32 %v328_v35  ;;  %v343_v38 = vadd.f32 %v968_v36, %v1313_v41 }
  0xf2   :  { %v1090_v37 = vpop.eup %1089  ;;  %1103 = vtanh.f32 %v333_v32  ;;  %v337_v39 = vpop.f32.mrf.mxu0 }
  0xf3   :  { %v1092_v40 = vpop.eup %1091  ;;  %v338_v42 = vadd.f32 %v1313_v41, %v337_v39  ;;  %1018 = vmatprep.mubr.msk.f32.mxu1 %vm433_vm2, %v1090_v37 }
  0xf4   :  { %v971_v43 = vpop.f32.mrf.mxu0  ;;  %1019 = vmatmul.mubr.msk.f32.gmra.mxu1 %vm433_vm2, %v1092_v40 }
  0xf5   :  { %1105 = vtanh.f32 %v338_v42  ;;  %v353_v45 = vadd.f32 %v971_v43, %v1313_v41 }
  0xf6   :  { %v1094_v44 = vpop.eup %1093  ;;  %1107 = vtanh.f32 %v343_v38  ;;  %v347_v46 = vpop.f32.mrf.mxu0 }
  0xf7   :  { %v1096_v47 = vpop.eup %1095  ;;  %v348_v48 = vadd.f32 %v1313_v41, %v347_v46  ;;  %1021 = vmatprep.mubr.msk.f32.mxu1 %vm433_vm2, %v1094_v44 }
  0xf8   :  { %v974_v49 = vpop.f32.mrf.mxu0  ;;  %1022 = vmatmul.mubr.msk.f32.gmra.mxu1 %vm433_vm2, %v1096_v47 }
  0xf9   :  { %1109 = vtanh.f32 %v348_v48  ;;  %v363_v51 = vadd.f32 %v974_v49, %v1313_v41 }
  0xfa   :  { %v1098_v50 = vpop.eup %1097  ;;  %1111 = vtanh.f32 %v353_v45  ;;  %v357_v52 = vpop.f32.mrf.mxu0 }
  0xfb   :  { %v1100_v53 = vpop.eup %1099  ;;  %v358_v54 = vadd.f32 %v1313_v41, %v357_v52  ;;  %1024 = vmatprep.mubr.msk.f32.mxu1 %vm433_vm2, %v1098_v50 }
  0xfc   :  { %v977_v55 = vpop.f32.mrf.mxu0  ;;  %1025 = vmatmul.mubr.msk.f32.gmra.mxu1 %vm433_vm2, %v1100_v53 }
  0xfd   :  { %1113 = vtanh.f32 %v358_v54  ;;  %v373_v57 = vadd.f32 %v977_v55, %v1313_v41 }
  0xfe   :  { %v1102_v56 = vpop.eup %1101  ;;  %1115 = vtanh.f32 %v363_v51  ;;  %v367_v58 = vpop.f32.mrf.mxu0 }
  0xff   :  { %v1104_v59 = vpop.eup %1103  ;;  %v368_v60 = vadd.f32 %v1313_v41, %v367_v58  ;;  %1027 = vmatprep.mubr.msk.f32.mxu1 %vm433_vm2, %v1102_v56 }
 0x100   :  { %v980_v61 = vpop.f32.mrf.mxu0  ;;  %1028 = vmatmul.mubr.msk.f32.gmra.mxu1 %vm433_vm2, %v1104_v59 }
 0x101   :  { %1117 = vtanh.f32 %v368_v60  ;;  %v383_v63 = vadd.f32 %v980_v61, %v1313_v41 }
 0x102   :  { %v1106_v62 = vpop.eup %1105  ;;  %1119 = vtanh.f32 %v373_v57  ;;  %v377_v0 = vpop.f32.mrf.mxu0 }
 0x103   :  { %v1108_v1 = vpop.eup %1107  ;;  %v378_v2 = vadd.f32 %v1313_v41, %v377_v0  ;;  %1030 = vmatprep.mubr.msk.f32.mxu1 %vm433_vm2, %v1106_v62 }
 0x104   :  { %1031 = vmatmul.mubr.msk.f32.gmra.mxu1 %vm433_vm2, %v1108_v1 }
 0x105   :  { %1121 = vtanh.f32 %v378_v2 }
 0x106   :  { %v1110_v3 = vpop.eup %1109  ;;  %1123 = vtanh.f32 %v383_v63 }
 0x107   :  { %v1112_v4 = vpop.eup %1111  ;;  %1033 = vmatprep.mubr.msk.f32.mxu1 %vm433_vm2, %v1110_v3 }
 0x108   :  { %1034 = vmatmul.mubr.msk.f32.gmra.mxu1 %vm433_vm2, %v1112_v4 }
 0x10a   :  { %v1114_v5 = vpop.eup %1113 }
 0x10b   :  { %v1116_v6 = vpop.eup %1115  ;;  %1036 = vmatprep.mubr.msk.f32.mxu1 %vm433_vm2, %v1114_v5 }
 0x10c   :  { %1037 = vmatmul.mubr.msk.f32.gmra.mxu1 %vm433_vm2, %v1116_v6 }
 0x10e   :  { %v1118_v7 = vpop.eup %1117 }
 0x10f   :  { %v1120_v41 = vpop.eup %1119  ;;  %1039 = vmatprep.mubr.msk.f32.mxu1 %vm433_vm2, %v1118_v7 }
 0x110   :  { %1040 = vmatmul.mubr.msk.f32.gmra.mxu1 %vm433_vm2, %v1120_v41 }
 0x112   :  { %v1122_v8 = vpop.eup %1121 }
 0x113   :  { %v1124_v9 = vpop.eup %1123  ;;  %1042 = vmatprep.mubr.msk.f32.mxu1 %vm433_vm2, %v1122_v8 }
 0x114   :  { %1043 = vmatmul.mubr.msk.f32.gmra.mxu1 %vm433_vm2, %v1124_v9 }
 0x198   :  { %v999_v11 = vpop.f32.mrf.mxu0 }
 0x199   :  { %v602_v12 = vadd.f32 %v999_v11, %v1382_v10 }
 0x19a   :  { %v596_v13 = vpop.f32.mrf.mxu0 }
 0x19b   :  { %756 = vst.msk [vmem:[%s1549_s5 + $0x8] sm:$0xff] %vm60_vm1, %v602_v12  ;;  %v597_v14 = vadd.f32 %v1382_v10, %v596_v13 }
 0x19c   :  { %v1002_v15 = vpop.f32.mrf.mxu1 }
 0x19d   :  { %755 = vst.msk [vmem:[%s1549_s5] sm:$0xff] %vm60_vm1, %v597_v14  ;;  %v612_v16 = vadd.f32 %v1002_v15, %v1382_v10 }
 0x19e   :  { %v606_v17 = vpop.f32.mrf.mxu1 }
 0x19f   :  { %758 = vst.msk [vmem:[%s1549_s5 + $0x18] sm:$0xff] %vm60_vm1, %v612_v16  ;;  %v607_v18 = vadd.f32 %v1382_v10, %v606_v17 }
 0x1a0   :  { %v1005_v19 = vpop.f32.mrf.mxu1 }
 0x1a1   :  { %757 = vst.msk [vmem:[%s1549_s5 + $0x10] sm:$0xff] %vm60_vm1, %v607_v18  ;;  %v622_v20 = vadd.f32 %v1005_v19, %v1382_v10 }
 0x1a2   :  { %v616_v21 = vpop.f32.mrf.mxu1 }
 0x1a3   :  { %760 = vst.msk [vmem:[%s1549_s5 + $0x28] sm:$0xff] %vm60_vm1, %v622_v20  ;;  %v617_v22 = vadd.f32 %v1382_v10, %v616_v21 }
 0x1a4   :  { %v1008_v23 = vpop.f32.mrf.mxu1 }
 0x1a5   :  { %759 = vst.msk [vmem:[%s1549_s5 + $0x20] sm:$0xff] %vm60_vm1, %v617_v22  ;;  %v632_v24 = vadd.f32 %v1008_v23, %v1382_v10 }
 0x1a6   :  { %v626_v25 = vpop.f32.mrf.mxu1 }
 0x1a7   :  { %762 = vst.msk [vmem:[%s1549_s5 + $0x38] sm:$0xff] %vm60_vm1, %v632_v24  ;;  %v627_v26 = vadd.f32 %v1382_v10, %v626_v25 }
 0x1a8   :  { %v1011_v27 = vpop.f32.mrf.mxu1 }
 0x1a9   :  { %761 = vst.msk [vmem:[%s1549_s5 + $0x30] sm:$0xff] %vm60_vm1, %v627_v26  ;;  %v642_v28 = vadd.f32 %v1011_v27, %v1382_v10 }
 0x1aa   :  { %v636_v29 = vpop.f32.mrf.mxu1 }
 0x1ab   :  { %764 = vst.msk [vmem:[%s1549_s5 + $0x48] sm:$0xff] %vm60_vm1, %v642_v28  ;;  %v637_v30 = vadd.f32 %v1382_v10, %v636_v29 }
 0x1ac   :  { %v1014_v31 = vpop.f32.mrf.mxu1 }
 0x1ad   :  { %763 = vst.msk [vmem:[%s1549_s5 + $0x40] sm:$0xff] %vm60_vm1, %v637_v30  ;;  %v652_v32 = vadd.f32 %v1014_v31, %v1382_v10 }
 0x1ae   :  { %v646_v33 = vpop.f32.mrf.mxu1 }
 0x1af   :  { %766 = vst.msk [vmem:[%s1549_s5 + $0x58] sm:$0xff] %vm60_vm1, %v652_v32  ;;  %v647_v34 = vadd.f32 %v1382_v10, %v646_v33 }
 0x1b0   :  { %v1017_v35 = vpop.f32.mrf.mxu1 }
 0x1b1   :  { %765 = vst.msk [vmem:[%s1549_s5 + $0x50] sm:$0xff] %vm60_vm1, %v647_v34  ;;  %v662_v36 = vadd.f32 %v1017_v35, %v1382_v10 }
 0x1b2   :  { %v656_v37 = vpop.f32.mrf.mxu1 }
 0x1b3   :  { %768 = vst.msk [vmem:[%s1549_s5 + $0x68] sm:$0xff] %vm60_vm1, %v662_v36  ;;  %v657_v38 = vadd.f32 %v1382_v10, %v656_v37 }
 0x1b4   :  { %v1020_v39 = vpop.f32.mrf.mxu1 }
 0x1b5   :  { %767 = vst.msk [vmem:[%s1549_s5 + $0x60] sm:$0xff] %vm60_vm1, %v657_v38  ;;  %v672_v40 = vadd.f32 %v1020_v39, %v1382_v10 }
 0x1b6   :  { %v666_v42 = vpop.f32.mrf.mxu1 }
 0x1b7   :  { %770 = vst.msk [vmem:[%s1549_s5 + $0x78] sm:$0xff] %vm60_vm1, %v672_v40  ;;  %v667_v43 = vadd.f32 %v1382_v10, %v666_v42 }
 0x1b8   :  { %v1023_v44 = vpop.f32.mrf.mxu1 }
 0x1b9   :  { %769 = vst.msk [vmem:[%s1549_s5 + $0x70] sm:$0xff] %vm60_vm1, %v667_v43  ;;  %v682_v45 = vadd.f32 %v1023_v44, %v1382_v10 }
 0x1ba   :  { %v676_v46 = vpop.f32.mrf.mxu1 }
 0x1bb   :  { %772 = vst.msk [vmem:[%s1549_s5 + $0x88] sm:$0xff] %vm60_vm1, %v682_v45  ;;  %v677_v47 = vadd.f32 %v1382_v10, %v676_v46 }
 0x1bc   :  { %v1026_v48 = vpop.f32.mrf.mxu1 }
 0x1bd   :  { %771 = vst.msk [vmem:[%s1549_s5 + $0x80] sm:$0xff] %vm60_vm1, %v677_v47  ;;  %v692_v49 = vadd.f32 %v1026_v48, %v1382_v10 }
 0x1be   :  { %v686_v50 = vpop.f32.mrf.mxu1 }
 0x1bf   :  { %774 = vst.msk [vmem:[%s1549_s5 + $0x98] sm:$0xff] %vm60_vm1, %v692_v49  ;;  %v687_v51 = vadd.f32 %v1382_v10, %v686_v50 }
 0x1c0   :  { %v1029_v52 = vpop.f32.mrf.mxu1 }
 0x1c1   :  { %773 = vst.msk [vmem:[%s1549_s5 + $0x90] sm:$0xff] %vm60_vm1, %v687_v51  ;;  %v702_v53 = vadd.f32 %v1029_v52, %v1382_v10 }
 0x1c2   :  { %v696_v54 = vpop.f32.mrf.mxu1 }
 0x1c3   :  { %776 = vst.msk [vmem:[%s1549_s5 + $0xa8] sm:$0xff] %vm60_vm1, %v702_v53  ;;  %v697_v55 = vadd.f32 %v1382_v10, %v696_v54 }
 0x1c4   :  { %v1032_v56 = vpop.f32.mrf.mxu1 }
 0x1c5   :  { %775 = vst.msk [vmem:[%s1549_s5 + $0xa0] sm:$0xff] %vm60_vm1, %v697_v55  ;;  %v712_v57 = vadd.f32 %v1032_v56, %v1382_v10 }
 0x1c6   :  { %v706_v58 = vpop.f32.mrf.mxu1 }
 0x1c7   :  { %778 = vst.msk [vmem:[%s1549_s5 + $0xb8] sm:$0xff] %vm60_vm1, %v712_v57  ;;  %v707_v59 = vadd.f32 %v1382_v10, %v706_v58 }
 0x1c8   :  { %v1035_v60 = vpop.f32.mrf.mxu1 }
 0x1c9   :  { %777 = vst.msk [vmem:[%s1549_s5 + $0xb0] sm:$0xff] %vm60_vm1, %v707_v59  ;;  %v722_v61 = vadd.f32 %v1035_v60, %v1382_v10 }
 0x1ca   :  { %v716_v62 = vpop.f32.mrf.mxu1 }
 0x1cb   :  { %780 = vst.msk [vmem:[%s1549_s5 + $0xc8] sm:$0xff] %vm60_vm1, %v722_v61  ;;  %v717_v63 = vadd.f32 %v1382_v10, %v716_v62 }
 0x1cc   :  { %v1038_v0 = vpop.f32.mrf.mxu1 }
 0x1cd   :  { %779 = vst.msk [vmem:[%s1549_s5 + $0xc0] sm:$0xff] %vm60_vm1, %v717_v63  ;;  %v732_v1 = vadd.f32 %v1038_v0, %v1382_v10 }
 0x1ce   :  { %v726_v2 = vpop.f32.mrf.mxu1 }
 0x1cf   :  { %782 = vst.msk [vmem:[%s1549_s5 + $0xd8] sm:$0xff] %vm60_vm1, %v732_v1  ;;  %v727_v3 = vadd.f32 %v1382_v10, %v726_v2 }
 0x1d0   :  { %v1041_v4 = vpop.f32.mrf.mxu1 }
 0x1d1   :  { %781 = vst.msk [vmem:[%s1549_s5 + $0xd0] sm:$0xff] %vm60_vm1, %v727_v3  ;;  %v742_v5 = vadd.f32 %v1041_v4, %v1382_v10 }
 0x1d2   :  { %v736_v6 = vpop.f32.mrf.mxu1 }
 0x1d3   :  { %784 = vst.msk [vmem:[%s1549_s5 + $0xe8] sm:$0xff] %vm60_vm1, %v742_v5  ;;  %v737_v7 = vadd.f32 %v1382_v10, %v736_v6 }
 0x1d4   :  { %v1044_v41 = vpop.f32.mrf.mxu1 }
 0x1d5   :  { %783 = vst.msk [vmem:[%s1549_s5 + $0xe0] sm:$0xff] %vm60_vm1, %v737_v7  ;;  %v752_v8 = vadd.f32 %v1044_v41, %v1382_v10 }
 0x1d6   :  { %v746_v9 = vpop.f32.mrf.mxu1 }
 0x1d7   :  { %786 = vst.msk [vmem:[%s1549_s5 + $0xf8] sm:$0xff] %vm60_vm1, %v752_v8  ;;  %v747_v11 = vadd.f32 %v1382_v10, %v746_v9 }
 0x1d9   :  { %785 = vst.msk [vmem:[%s1549_s5 + $0xf0] sm:$0xff] %vm60_vm1, %v747_v11 }

</bundles_post_ra>
